<compile_context>
chip_gen: v6e
topology: v6e:2x2x1
jax: 0.10.0
libtpu: 0.0.40
codegen_flags: <defaults>
</compile_context>

<pallas_src>
import jax
import jax.numpy as jnp
from jax.experimental import pallas as pl
from jax.experimental.pallas import tpu as pltpu


# ----------------------------------------------------------------------------- kernel
def _drop_path_kernel(scale_ref, x_ref, o_ref):
    # scale_ref: [b_tile, 1]   per-sample keep/scale factor
    # x_ref/o_ref: [b_tile, fb] activation tile (lane-dense last dim)
    o_ref[...] = x_ref[...] * scale_ref[...]


def _round_down(v: int, m: int) -> int:
    return (v // m) * m


# ----------------------------------------------------------------------------- wrapper
def drop_path_forward(x, key, drop_prob: float = 0.0, training: bool = False,
                      scale_by_keep: bool = True, *,
                      block_bytes: int = 2 << 20,   # ~2 MiB/block: 85%+ of HBM roofline
                      max_b_tile: int = 256,        # multiple of 32 -> valid sublane tile
                      in_place: bool = False):
    """Pallas DropPath. `key` supplies the per-sample Bernoulli randomness.

    drop_prob / training / scale_by_keep must be static Python values (they
    select code paths at trace time), exactly like the PyTorch module.
    """
    if drop_prob == 0.0 or not training:
        return x  # identity fast path: no kernel launch

    keep_prob = 1.0 - drop_prob
    b = x.shape[0]
    itemsize = jnp.dtype(x.dtype).itemsize

    # Per-sample Bernoulli(keep_prob) mask (B scalars), optionally 1/keep_prob scaled.
    keep = jax.random.bernoulli(key, p=keep_prob, shape=(b,)).astype(x.dtype)
    if keep_prob > 0.0 and scale_by_keep:
        scale = keep / jnp.asarray(keep_prob, dtype=x.dtype)
    else:
        scale = keep

    # Flatten everything after the batch dim -> lane-dense [B, F] layout.
    # TODO(synk): verify in the HLO that this reshape (and the inverse on the
    # way out) does not materialize an HBM relayout pass for awkward trailing
    # dims; if it does, tile over the original shape with a multi-dim BlockSpec.
    orig_shape = x.shape
    f = 1
    for s in orig_shape[1:]:
        f *= s

    # --- small-batch sublane densification ------------------------------------
    # With b below the sublane count, every (8,128) tile would be mostly padding.
    # Fold r feature chunks into the batch axis; each row still belongs to
    # exactly one sample, so replicating the per-sample scale r times is exact.
    sublanes = max(1, 32 // itemsize)            # 8 (f32) / 16 (bf16) / 32 (int8)
    r = 1
    if 0 < b < sublanes and f >= 256:
        for cand in range(max(1, sublanes // b), 1, -1):
            if f % cand == 0 and (f // cand) % 128 == 0:
                r = cand
                break
    b2, f2 = b * r, f // r
    x2 = x.reshape(b2, f2)
    scale2 = (jnp.repeat(scale, r) if r > 1 else scale).reshape(b2, 1)

    # --- byte-budgeted tile sizes ---------------------------------------------
    b_tile = b2 if b2 <= max_b_tile else max_b_tile
    if f2 < 256:
        fb = f2                                   # single full-extent feature block
    else:
        fb_elems = max(128, block_bytes // max(1, b_tile * itemsize))
        fb = min(_round_down(fb_elems, 128), _round_down(f2, 128))

    gb = pl.cdiv(b2, b_tile)
    gf = pl.cdiv(f2, fb)

    # v7x has 2 TensorCores: for tensors big enough to matter, never emit a
    # single-block grid — split F into >= 2 parallel, 128-aligned blocks.
    if gb * gf == 1 and b2 * f2 * itemsize > (1 << 20) and f2 >= 256:
        fb = max(128, _round_down((fb + 1) // 2, 128))
        gf = pl.cdiv(f2, fb)

    block_actual = b_tile * fb * itemsize
    # 2 in-flight x buffers + 2 out buffers + scale + headroom; capped at the
    # v7x 32 MiB scoped default so one setting works on v5e/v6e/v7x.
    vmem_limit = int(min(32 << 20, max(4 * block_actual + (2 << 20), 8 << 20)))

    cost = pl.CostEstimate(flops=b2 * f2, transcendentals=0,
                           bytes_accessed=2 * b2 * f2 * itemsize + b2 * itemsize)

    out = pl.pallas_call(
        _drop_path_kernel,
        out_shape=jax.ShapeDtypeStruct((b2, f2), x.dtype),
        grid=(gb, gf),
        in_specs=[
            pl.BlockSpec((b_tile, 1), lambda i, j: (i, 0)),    # per-sample scale
            pl.BlockSpec((b_tile, fb), lambda i, j: (i, j)),   # activation tile
        ],
        out_specs=pl.BlockSpec((b_tile, fb), lambda i, j: (i, j)),
        compiler_params=pltpu.CompilerParams(
            dimension_semantics=("parallel", "parallel"),
            vmem_limit_bytes=vmem_limit),
        cost_estimate=cost,
        # In-place update of x2 when the caller donates x; XLA copies otherwise.
        input_output_aliases=({1: 0} if in_place else {}),
    )(scale2, x2)

    return out.reshape(orig_shape)


# ----------------------------------------------------------------------------- pure-JAX reference
def _reference_drop_path(x, key, drop_prob, training, scale_by_keep):
    if drop_prob == 0.0 or not training:
        return x
    keep_prob = 1.0 - drop_prob
    shape = (x.shape[0],) + (1,) * (x.ndim - 1)
    keep = jax.random.bernoulli(key, p=keep_prob, shape=shape).astype(x.dtype)
    if keep_prob > 0.0 and scale_by_keep:
        keep = keep / jnp.asarray(keep_prob, dtype=x.dtype)
    return x * keep


# ----------------------------------------------------------------------------- main
if __name__ == "__main__":
    key = jax.random.PRNGKey(0)
    k_x, k_mask, k_x3 = jax.random.split(key, 3)

    drop_prob = 0.25
    keep_prob = 1.0 - drop_prob

    # --- spec shape (B=2, C=4, H=16, W=16): exercises small-batch densification
    x = jax.random.normal(k_x, (2, 4, 16, 16), jnp.float32)
    out = drop_path_forward(x, k_mask, drop_prob=drop_prob, training=True,
                            scale_by_keep=True)
    out = jax.block_until_ready(out)
    ref = _reference_drop_path(x, k_mask, drop_prob, True, True)
    assert out.shape == x.shape
    assert jnp.allclose(out, ref, atol=1e-6, rtol=1e-6), \
        float(jnp.max(jnp.abs(out - ref)))

    # each sample is either fully dropped (zeros) or scaled by 1/keep_prob
    for bidx in range(x.shape[0]):
        is_zero = bool(jnp.all(out[bidx] == 0))
        is_scaled = bool(jnp.allclose(out[bidx], x[bidx] / keep_prob, atol=1e-5))
        assert is_zero or is_scaled

    # --- multi-step feature grid (tiny block budget forces fb=128, gf>1) ---
    out_tiled = drop_path_forward(x, k_mask, drop_prob=drop_prob, training=True,
                                  scale_by_keep=True, block_bytes=4096)
    assert jnp.allclose(jax.block_until_ready(out_tiled), ref, atol=1e-6, rtol=1e-6)

    # --- batch tiling + ragged (non-128-divisible) feature tiles ---
    x3 = jax.random.normal(k_x3, (12, 3, 10, 10), jnp.float32)   # F = 300
    out3 = drop_path_forward(x3, k_mask, drop_prob=drop_prob, training=True,
                             scale_by_keep=True, block_bytes=4096, max_b_tile=8)
    out3 = jax.block_until_ready(out3)
    ref3 = _reference_drop_path(x3, k_mask, drop_prob, True, True)
    assert jnp.allclose(out3, ref3, atol=1e-6, rtol=1e-6), \
        float(jnp.max(jnp.abs(out3 - ref3)))

    # --- scale_by_keep=False path ---
    out_ns = drop_path_forward(x, k_mask, drop_prob=drop_prob, training=True,
                               scale_by_keep=False)
    out_ns = jax.block_until_ready(out_ns)
    ref_ns = _reference_drop_path(x, k_mask, drop_prob, True, False)
    assert jnp.allclose(out_ns, ref_ns, atol=1e-6, rtol=1e-6)

    # --- in-place aliasing path (XLA inserts a copy for non-donated x) ---
    out_ip = drop_path_forward(x, k_mask, drop_prob=drop_prob, training=True,
                               scale_by_keep=True, in_place=True)
    assert jnp.allclose(jax.block_until_ready(out_ip), ref, atol=1e-6, rtol=1e-6)

    # --- identity fast paths (no kernel launch) ---
    assert jnp.array_equal(drop_path_forward(x, k_mask, drop_prob=drop_prob,
                                             training=False), x)
    assert jnp.array_equal(drop_path_forward(x, k_mask, drop_prob=0.0,
                                             training=True), x)

    print("KERNEL_OK")
</pallas_src>

<mosaic_0001>
module attributes {stable_mosaic.version = 11 : i64} {
  func.func @_drop_path_kernel(%arg0: i32, %arg1: i32, %arg2: memref<8x1xf32, #tpu.memory_space<vmem>>, %arg3: memref<8x256xf32, #tpu.memory_space<vmem>>, %arg4: memref<8x256xf32, #tpu.memory_space<vmem>>) attributes {dimension_semantics = [#tpu.dimension_semantics<parallel>, #tpu.dimension_semantics<parallel>], iteration_bounds = array<i64: 1, 1>, scalar_prefetch = 0 : i64, scratch_operands = 0 : i64, tpu.core_type = #tpu.core_type<tc>, window_params = [{transform_indices = @transform_0, window_bounds = array<i64: 8, 1>}, {transform_indices = @transform_1, window_bounds = array<i64: 8, 256>}, {transform_indices = @transform_2, window_bounds = array<i64: 8, 256>}]} {
    %c0 = arith.constant 0 : index
    %c0_0 = arith.constant 0 : index
    %0 = vector.load %arg3[%c0, %c0_0] : memref<8x256xf32, #tpu.memory_space<vmem>>, vector<8x256xf32>
    %c0_1 = arith.constant 0 : index
    %c0_2 = arith.constant 0 : index
    %1 = vector.load %arg2[%c0_1, %c0_2] : memref<8x1xf32, #tpu.memory_space<vmem>>, vector<8x1xf32>
    %2 = vector.broadcast %1 : vector<8x1xf32> to vector<8x256xf32>
    %3 = arith.mulf %0, %2 : vector<8x256xf32>
    %c0_3 = arith.constant 0 : index
    %c0_4 = arith.constant 0 : index
    %4 = vector.load %arg4[%c0_3, %c0_4] : memref<8x256xf32, #tpu.memory_space<vmem>>, vector<8x256xf32>
    tpu.vector_store %arg4[%c0_3, %c0_4], %3 {strides = array<i32>} : memref<8x256xf32, #tpu.memory_space<vmem>>, vector<8x256xf32>,
    return
  }
  func.func @transform_0(%arg0: i32, %arg1: i32) -> (i32, i32) {
    %c0_i32 = arith.constant 0 : i32
    %c0_i32_0 = arith.constant 0 : i32
    return %arg0, %c0_i32 : i32, i32
  }
  func.func @transform_1(%arg0: i32, %arg1: i32) -> (i32, i32) {
    %c0_i32 = arith.constant 0 : i32
    return %arg0, %arg1 : i32, i32
  }
  func.func @transform_2(%arg0: i32, %arg1: i32) -> (i32, i32) {
    %c0_i32 = arith.constant 0 : i32
    return %arg0, %arg1 : i32, i32
  }
}

</mosaic_0001>

<bundles_post_ra>
// kernel: tpu_custom_call.1
= control target key start
LH: loop header
LB: loop body
LE: loop exit
PB: predicated region body
PF: predicated region fallthrough
CT: control target
= control target key end

     0   :  { %7 = vsyncpa [#allocation3], 0  ;;  %s126_s0 = inlined_call_operand.vmem [shape: f32[8,1], index: 0, kind: input, shape index: {}]   ;;  %s127_s1 = inlined_call_operand.hbm [shape: f32[8,256], index: 1, kind: input, shape index: {}]   ;;  %s128_s2 = inlined_call_operand.hbm [shape: f32[8,256], index: 2, kind: output, shape index: {}]  }
   0x1   :  { %8 = vsyncpa [#allocation4], 0  ;;  %s99_s9 = smov [#allocation2]  }
   0x2   :  { %s17_s10 = sshll.u32 %s99_s9, 4  ;;  %s18_s10 = int_to_ptr.vmem [resolvable:$true] %s17_s10 }
   0x3   :  { %s63_s11 = scalar_lea.vmem %s18_s10, 256  ;;  %p68_p1 = scmp.lt.s32.totalorder %s18_s10, %s18_s10 }
   0x4   :  { %p64_p0 = scmp.ne.s32.totalorder %s18_s10, %s63_s11  ;;  %p69_p2 = scmp.lt.s32.totalorder %s63_s11, %s63_s11 }
   0x6   :  { %p70_p3 = por %p69_p2, %p68_p1 }
   0x8   :  { %p71_p4 = pnand %p70_p3, %p64_p0 }
   0xa   :  { %74 = shalt.err (!%p71_p4)
}
   0xb   :  { %20 = dma.hbm_to_vmem [thread:$0]  %s127_s1, 256, %s18_s10, [#allocation3]  }
   0xc   :  { %95 = dma.done.wait [#allocation3], 256  }
   0xd   :  { %96 = vsyncadd [#allocation3], 4294967040  ;;  %v100_v0 = vmov 0   ;;  %v26_v1 = vld [vmem:[%s126_s0] sm:$0xff]  ;;  %v25_v3 = vld [vmem:[#allocation2 + $0x8] sm:$0xff]  ;;  %s101_s16 = smov [#allocation5]  }
   0xe   :  { %54 = vset.pattern.permute.xlu0 %v100_v0  ;;  %v24_v2 = vld [vmem:[#allocation2] sm:$0xff]  ;;  %s42_s17 = sshll.u32 %s101_s16, 4  ;;  %s43_s17 = int_to_ptr.vmem [resolvable:$true] %s42_s17 }
   0xf   :  { %29 = vperm.xlu0 %54, %v26_v1   ;;  %s75_s1 = scalar_lea.vmem %s43_s17, 256  ;;  %p80_p6 = scmp.lt.s32.totalorder %s43_s17, %s43_s17 }
  0x10   :  { %p76_p5 = scmp.ne.s32.totalorder %s43_s17, %s75_s1  ;;  %p81_p7 = scmp.lt.s32.totalorder %s75_s1, %s75_s1 }
  0x12   :  { %p82_p8 = por %p81_p7, %p80_p6 }
  0x14   :  { %p83_p9 = pnand %p82_p8, %p76_p5 }
  0x8a   :  { %v30_v4 = vpop.permute.xlu0 %29 }
  0x8b   :  { %v32_v5 = vmul.f32 %v30_v4, %v24_v2  ;;  %v33_v6 = vmul.f32 %v30_v4, %v25_v3 }
  0x8d   :  { %34 = vst [vmem:[#allocation5] sm:$0xff] %v32_v5  ;;  %35 = vst [vmem:[#allocation5 + $0x8] sm:$0xff] %v33_v6 }
  0x8e   :  { %86 = shalt.err (!%p83_p9)
}
  0x8f   :  { %45 = dma.vmem_to_hbm [thread:$0]  %s43_s17, 256, %s128_s2, [#allocation4]  }
  0x90   :  { %97 = dma.done.wait [#allocation4], 256  }
  0x91   :  { %98 = vsyncadd [#allocation4], 4294967040 }
  0x92   :  { %49 = vsyncpa [#allocation3], 1 }
  0x93   :  { %50 = vsyncpa [#allocation4], 1 }

</bundles_post_ra>
